<compile_context>
chip_gen: v7x
topology: tpu7x:2x2x1
jax: 0.10.0
libtpu: 0.0.40
codegen_flags: <defaults>
</compile_context>

<pallas_src>
import functools

import jax
import jax.numpy as jnp
from jax.experimental import pallas as pl
from jax.experimental.pallas import tpu as pltpu

N_LETTERS = 7 + 1        # num_embeddings (== 8, exactly one sublane tile)
EMB_DIM = 10             # embedding_dim == hidden_size
NUM_LAYERS = 1

BP = 8                   # padded batch  (sublane multiple)
DP = 16                  # padded hidden / embedding dim (was 128; 16 is plenty)

# Row layout of the packed parameter slab (every section starts on a sublane tile).
ROW_EMB = 0              # 8  rows: embedding table
ROW_WIH = 8              # 16 rows: W_ih^T
ROW_WHH = 24             # 16 rows: W_hh^T
ROW_W1 = 40              # 16 rows: W1^T
ROW_TAIL = 56            # 8  rows: [b_ih+b_hh, b1, w2, (b2 at col 0), 0...]
SLAB_ROWS = 64


def rnn_mlp_kernel(tok_ref, slab_ref, out_ref, *, seq_len):
    """Embedding + h_t = tanh(x_t@Wih^T + h@Whh^T + b) + (Linear -> ReLU -> Linear)."""
    # --- 0) Static slices of the single packed weight slab (one DMA in the prologue).
    emb = slab_ref[pl.ds(ROW_EMB, N_LETTERS), :]          # (8,  DP)
    wih = slab_ref[pl.ds(ROW_WIH, DP), :]                 # (DP, DP) == W_ih^T padded
    whh = slab_ref[pl.ds(ROW_WHH, DP), :]                 # (DP, DP) == W_hh^T padded
    w1 = slab_ref[pl.ds(ROW_W1, DP), :]                   # (DP, DP) == W1^T  padded
    tail = slab_ref[pl.ds(ROW_TAIL, 8), :]                # (8,  DP)
    b_row = tail[0:1, :]                                  # b_ih + b_hh
    b1 = tail[1:2, :]
    w2 = tail[2:3, :]                                     # row vector for lane reduce
    b2 = tail[3:4, 0:1]                                   # (1, 1) scalar

    # --- 1) Project the whole 8-row vocab once (bias folded in); stays in vregs.
    #        proj[v] = emb[v] @ W_ih^T + (b_ih + b_hh)
    proj = jnp.dot(emb, wih, preferred_element_type=jnp.float32) + b_row   # (8, DP)

    # --- 2) Per-(t, b) inputs via one single one-hot matmul on the MXU.
    #        Padded batch rows carry token id -1 -> all-zero one-hot row -> xw row == 0,
    #        so padded hidden rows stay exactly 0 through the recurrence.
    tok = tok_ref[...]                                                    # (L*BP, 1) i32
    cols = jax.lax.broadcasted_iota(jnp.int32, (seq_len * BP, N_LETTERS), 1)
    onehot = (cols == tok).astype(jnp.float32)                            # (L*BP, 8)
    xw = jnp.dot(onehot, proj, preferred_element_type=jnp.float32)        # (L*BP, DP)

    # --- 3) Recurrence, fully unrolled; only h @ Whh^T is serial.  h0 == 0, so step 0
    #        needs no matmul at all.
    h = jnp.tanh(jax.lax.slice(xw, (0, 0), (BP, DP)))
    for t in range(1, seq_len):
        xw_t = jax.lax.slice(xw, (t * BP, 0), ((t + 1) * BP, DP))         # (BP, DP)
        h = jnp.tanh(xw_t + jnp.dot(h, whh, preferred_element_type=jnp.float32))

    # --- 4) Head: Linear -> ReLU, then the 1-wide Linear as multiply + lane reduce.
    z = jnp.maximum(
        jnp.dot(h, w1, preferred_element_type=jnp.float32) + b1, 0.0)
    out_ref[...] = jnp.sum(z * w2, axis=-1, keepdims=True) + b2


def init_params(key):
    ks = jax.random.split(key, 9)
    s = 1.0 / jnp.sqrt(jnp.float32(EMB_DIM))
    return dict(
        emb=jax.random.normal(ks[0], (N_LETTERS, EMB_DIM), jnp.float32),
        # nn.RNN parameters (PyTorch convention: W_ih (H, in), W_hh (H, H))
        w_ih=jax.random.uniform(ks[1], (EMB_DIM, EMB_DIM), jnp.float32, -s, s),
        w_hh=jax.random.uniform(ks[2], (EMB_DIM, EMB_DIM), jnp.float32, -s, s),
        b_ih=jax.random.uniform(ks[3], (EMB_DIM,), jnp.float32, -s, s),
        b_hh=jax.random.uniform(ks[4], (EMB_DIM,), jnp.float32, -s, s),
        # post_rnn: Linear(num_layers*H -> H), Linear(H -> 1)
        w1=jax.random.uniform(ks[5], (EMB_DIM, NUM_LAYERS * EMB_DIM), jnp.float32, -s, s),
        b1=jax.random.uniform(ks[6], (EMB_DIM,), jnp.float32, -s, s),
        w2=jax.random.uniform(ks[7], (1, EMB_DIM), jnp.float32, -s, s),
        b2=jax.random.uniform(ks[8], (1,), jnp.float32, -s, s),
    )


def prepare_params(params):
    """Pack all (transposed, lightly padded) weights into one (64, 16) f32 HBM slab."""
    slab = jnp.zeros((SLAB_ROWS, DP), jnp.float32)
    slab = slab.at[ROW_EMB:ROW_EMB + N_LETTERS, :EMB_DIM].set(params["emb"])
    slab = slab.at[ROW_WIH:ROW_WIH + EMB_DIM, :EMB_DIM].set(params["w_ih"].T)
    slab = slab.at[ROW_WHH:ROW_WHH + EMB_DIM, :EMB_DIM].set(params["w_hh"].T)
    slab = slab.at[ROW_W1:ROW_W1 + EMB_DIM, :EMB_DIM].set(params["w1"].T)
    slab = slab.at[ROW_TAIL + 0, :EMB_DIM].set(params["b_ih"] + params["b_hh"])
    slab = slab.at[ROW_TAIL + 1, :EMB_DIM].set(params["b1"])
    slab = slab.at[ROW_TAIL + 2, :EMB_DIM].set(params["w2"][0])
    slab = slab.at[ROW_TAIL + 3, 0].set(params["b2"][0])
    return slab


@jax.jit
def forward(tokens, slab):
    B, L = tokens.shape
    assert B <= BP, "batch must fit the padded sublane tile"
    # Time-major padded token column: row t*BP + b holds token[b, t]; padded batch
    # rows get -1 so their one-hot row (and thus their xw / h rows) is exactly zero.
    tok_col = jnp.full((L, BP), -1, jnp.int32)
    tok_col = tok_col.at[:, :B].set(jnp.transpose(tokens).astype(jnp.int32))
    tok_col = tok_col.reshape(L * BP, 1)

    kernel = functools.partial(rnn_mlp_kernel, seq_len=L)
    out_pad = pl.pallas_call(
        kernel,
        out_shape=jax.ShapeDtypeStruct((BP, 1), jnp.float32),
        in_specs=[
            pl.BlockSpec(memory_space=pltpu.MemorySpace.VMEM),   # token column
            pl.BlockSpec(memory_space=pltpu.MemorySpace.VMEM),   # packed weight slab
        ],
        out_specs=pl.BlockSpec(memory_space=pltpu.MemorySpace.VMEM),
    )(tok_col, slab)

    return out_pad[:B, :]                                        # (B, 1)


def forward_ref(tokens, params):
    """Pure-JAX reference matching the PyTorch forward pass."""
    emb = params["emb"][tokens]                                  # (B, L, D)
    B = tokens.shape[0]

    def step(h, xt):
        h = jnp.tanh(xt @ params["w_ih"].T + params["b_ih"]
                     + h @ params["w_hh"].T + params["b_hh"])
        return h, h

    h0 = jnp.zeros((B, EMB_DIM), jnp.float32)
    h, _ = jax.lax.scan(step, h0, jnp.transpose(emb, (1, 0, 2)))
    z = jnp.maximum(h @ params["w1"].T + params["b1"], 0.0)
    return z @ params["w2"].T + params["b2"]


if __name__ == "__main__":
    key = jax.random.PRNGKey(0)
    k_param, k_tok = jax.random.split(key)
    params = init_params(k_param)
    slab = prepare_params(params)

    B, L = 2, 8
    tokens = jax.random.randint(k_tok, (B, L), 0, N_LETTERS, dtype=jnp.int32)

    out = forward(tokens, slab)
    out = jax.block_until_ready(out)

    ref = forward_ref(tokens, params)
    assert out.shape == (B, 1)
    assert jnp.allclose(out, ref, rtol=1e-3, atol=1e-3), (
        f"max abs diff = {jnp.max(jnp.abs(out - ref))}")

    print("KERNEL_OK")
</pallas_src>

<mosaic_0001>
module attributes {stable_mosaic.version = 11 : i64} {
  func.func @rnn_mlp_kernel(%arg0: memref<64x1xi32, #tpu.memory_space<vmem>>, %arg1: memref<64x16xf32, #tpu.memory_space<vmem>>, %arg2: memref<8x1xf32, #tpu.memory_space<vmem>>) attributes {dimension_semantics = [], scalar_prefetch = 0 : i64, scratch_operands = 0 : i64, tpu.core_type = #tpu.core_type<tc>} {
    %c0 = arith.constant 0 : index
    %c0_0 = arith.constant 0 : index
    %0 = vector.load %arg1[%c0, %c0_0] : memref<64x16xf32, #tpu.memory_space<vmem>>, vector<8x16xf32>
    %c8 = arith.constant 8 : index
    %c0_1 = arith.constant 0 : index
    %1 = vector.load %arg1[%c8, %c0_1] : memref<64x16xf32, #tpu.memory_space<vmem>>, vector<16x16xf32>
    %c24 = arith.constant 24 : index
    %c0_2 = arith.constant 0 : index
    %2 = vector.load %arg1[%c24, %c0_2] : memref<64x16xf32, #tpu.memory_space<vmem>>, vector<16x16xf32>
    %c40 = arith.constant 40 : index
    %c0_3 = arith.constant 0 : index
    %3 = vector.load %arg1[%c40, %c0_3] : memref<64x16xf32, #tpu.memory_space<vmem>>, vector<16x16xf32>
    %c56 = arith.constant 56 : index
    %c0_4 = arith.constant 0 : index
    %4 = vector.load %arg1[%c56, %c0_4] : memref<64x16xf32, #tpu.memory_space<vmem>>, vector<8x16xf32>
    %5 = vector.extract_strided_slice %4 {offsets = [0, 0], sizes = [1, 16], strides = [1, 1]} : vector<8x16xf32> to vector<1x16xf32>
    %6 = vector.extract_strided_slice %4 {offsets = [1, 0], sizes = [1, 16], strides = [1, 1]} : vector<8x16xf32> to vector<1x16xf32>
    %7 = vector.extract_strided_slice %4 {offsets = [2, 0], sizes = [1, 16], strides = [1, 1]} : vector<8x16xf32> to vector<1x16xf32>
    %8 = vector.extract_strided_slice %4 {offsets = [3, 0], sizes = [1, 1], strides = [1, 1]} : vector<8x16xf32> to vector<1x1xf32>
    %cst = arith.constant dense<0.000000e+00> : vector<8x16xf32>
    %9 = tpu.matmul %0, %1, %cst {dimension_numbers = #tpu.dot_dimension_numbers<[1], [0], [0], [1], [0, 0, 1, 1], [], []>} : vector<8x16xf32>, vector<16x16xf32>, vector<8x16xf32> -> vector<8x16xf32>
    %10 = vector.broadcast %5 : vector<1x16xf32> to vector<8x16xf32>
    %11 = arith.addf %9, %10 : vector<8x16xf32>
    %c0_5 = arith.constant 0 : index
    %c0_6 = arith.constant 0 : index
    %12 = vector.load %arg0[%c0_5, %c0_6] : memref<64x1xi32, #tpu.memory_space<vmem>>, vector<64x1xi32>
    %13 = tpu.iota {dimensions = array<i32: 1>} : vector<64x8xi32>
    %14 = vector.broadcast %12 : vector<64x1xi32> to vector<64x8xi32>
    %15 = arith.cmpi eq, %13, %14 : vector<64x8xi32>
    %16 = arith.extui %15 : vector<64x8xi1> to vector<64x8xi32>
    %17 = arith.sitofp %16 : vector<64x8xi32> to vector<64x8xf32>
    %cst_7 = arith.constant dense<0.000000e+00> : vector<64x16xf32>
    %18 = tpu.matmul %17, %11, %cst_7 {dimension_numbers = #tpu.dot_dimension_numbers<[1], [0], [0], [1], [0, 0, 1, 1], [], []>} : vector<64x8xf32>, vector<8x16xf32>, vector<64x16xf32> -> vector<64x16xf32>
    %19 = vector.extract_strided_slice %18 {offsets = [0, 0], sizes = [8, 16], strides = [1, 1]} : vector<64x16xf32> to vector<8x16xf32>
    %20 = math.tanh %19 : vector<8x16xf32>
    %21 = vector.extract_strided_slice %18 {offsets = [8, 0], sizes = [8, 16], strides = [1, 1]} : vector<64x16xf32> to vector<8x16xf32>
    %cst_8 = arith.constant dense<0.000000e+00> : vector<8x16xf32>
    %22 = tpu.matmul %20, %2, %cst_8 {dimension_numbers = #tpu.dot_dimension_numbers<[1], [0], [0], [1], [0, 0, 1, 1], [], []>} : vector<8x16xf32>, vector<16x16xf32>, vector<8x16xf32> -> vector<8x16xf32>
    %23 = arith.addf %21, %22 : vector<8x16xf32>
    %24 = math.tanh %23 : vector<8x16xf32>
    %25 = vector.extract_strided_slice %18 {offsets = [16, 0], sizes = [8, 16], strides = [1, 1]} : vector<64x16xf32> to vector<8x16xf32>
    %cst_9 = arith.constant dense<0.000000e+00> : vector<8x16xf32>
    %26 = tpu.matmul %24, %2, %cst_9 {dimension_numbers = #tpu.dot_dimension_numbers<[1], [0], [0], [1], [0, 0, 1, 1], [], []>} : vector<8x16xf32>, vector<16x16xf32>, vector<8x16xf32> -> vector<8x16xf32>
    %27 = arith.addf %25, %26 : vector<8x16xf32>
    %28 = math.tanh %27 : vector<8x16xf32>
    %29 = vector.extract_strided_slice %18 {offsets = [24, 0], sizes = [8, 16], strides = [1, 1]} : vector<64x16xf32> to vector<8x16xf32>
    %cst_10 = arith.constant dense<0.000000e+00> : vector<8x16xf32>
    %30 = tpu.matmul %28, %2, %cst_10 {dimension_numbers = #tpu.dot_dimension_numbers<[1], [0], [0], [1], [0, 0, 1, 1], [], []>} : vector<8x16xf32>, vector<16x16xf32>, vector<8x16xf32> -> vector<8x16xf32>
    %31 = arith.addf %29, %30 : vector<8x16xf32>
    %32 = math.tanh %31 : vector<8x16xf32>
    %33 = vector.extract_strided_slice %18 {offsets = [32, 0], sizes = [8, 16], strides = [1, 1]} : vector<64x16xf32> to vector<8x16xf32>
    %cst_11 = arith.constant dense<0.000000e+00> : vector<8x16xf32>
    %34 = tpu.matmul %32, %2, %cst_11 {dimension_numbers = #tpu.dot_dimension_numbers<[1], [0], [0], [1], [0, 0, 1, 1], [], []>} : vector<8x16xf32>, vector<16x16xf32>, vector<8x16xf32> -> vector<8x16xf32>
    %35 = arith.addf %33, %34 : vector<8x16xf32>
    %36 = math.tanh %35 : vector<8x16xf32>
    %37 = vector.extract_strided_slice %18 {offsets = [40, 0], sizes = [8, 16], strides = [1, 1]} : vector<64x16xf32> to vector<8x16xf32>
    %cst_12 = arith.constant dense<0.000000e+00> : vector<8x16xf32>
    %38 = tpu.matmul %36, %2, %cst_12 {dimension_numbers = #tpu.dot_dimension_numbers<[1], [0], [0], [1], [0, 0, 1, 1], [], []>} : vector<8x16xf32>, vector<16x16xf32>, vector<8x16xf32> -> vector<8x16xf32>
    %39 = arith.addf %37, %38 : vector<8x16xf32>
    %40 = math.tanh %39 : vector<8x16xf32>
    %41 = vector.extract_strided_slice %18 {offsets = [48, 0], sizes = [8, 16], strides = [1, 1]} : vector<64x16xf32> to vector<8x16xf32>
    %cst_13 = arith.constant dense<0.000000e+00> : vector<8x16xf32>
    %42 = tpu.matmul %40, %2, %cst_13 {dimension_numbers = #tpu.dot_dimension_numbers<[1], [0], [0], [1], [0, 0, 1, 1], [], []>} : vector<8x16xf32>, vector<16x16xf32>, vector<8x16xf32> -> vector<8x16xf32>
    %43 = arith.addf %41, %42 : vector<8x16xf32>
    %44 = math.tanh %43 : vector<8x16xf32>
    %45 = vector.extract_strided_slice %18 {offsets = [56, 0], sizes = [8, 16], strides = [1, 1]} : vector<64x16xf32> to vector<8x16xf32>
    %cst_14 = arith.constant dense<0.000000e+00> : vector<8x16xf32>
    %46 = tpu.matmul %44, %2, %cst_14 {dimension_numbers = #tpu.dot_dimension_numbers<[1], [0], [0], [1], [0, 0, 1, 1], [], []>} : vector<8x16xf32>, vector<16x16xf32>, vector<8x16xf32> -> vector<8x16xf32>
    %47 = arith.addf %45, %46 : vector<8x16xf32>
    %48 = math.tanh %47 : vector<8x16xf32>
    %cst_15 = arith.constant dense<0.000000e+00> : vector<8x16xf32>
    %49 = tpu.matmul %48, %3, %cst_15 {dimension_numbers = #tpu.dot_dimension_numbers<[1], [0], [0], [1], [0, 0, 1, 1], [], []>} : vector<8x16xf32>, vector<16x16xf32>, vector<8x16xf32> -> vector<8x16xf32>
    %50 = vector.broadcast %6 : vector<1x16xf32> to vector<8x16xf32>
    %51 = arith.addf %49, %50 : vector<8x16xf32>
    %cst_16 = arith.constant 0.000000e+00 : f32
    %52 = vector.broadcast %cst_16 : f32 to vector<8x16xf32>
    %53 = arith.maximumf %51, %52 : vector<8x16xf32>
    %54 = vector.broadcast %7 : vector<1x16xf32> to vector<8x16xf32>
    %55 = arith.mulf %53, %54 : vector<8x16xf32>
    %cst_17 = arith.constant dense<0.000000e+00> : vector<8xf32>
    %56 = vector.multi_reduction <add>, %55, %cst_17 [1] : vector<8x16xf32> to vector<8xf32>
    %57 = vector.shape_cast %56 : vector<8xf32> to vector<8x1xf32>
    %58 = vector.broadcast %8 : vector<1x1xf32> to vector<8x1xf32>
    %59 = arith.addf %57, %58 : vector<8x1xf32>
    %c0_18 = arith.constant 0 : index
    %c0_19 = arith.constant 0 : index
    %60 = vector.load %arg2[%c0_18, %c0_19] : memref<8x1xf32, #tpu.memory_space<vmem>>, vector<8x1xf32>
    tpu.vector_store %arg2[%c0_18, %c0_19], %59 {strides = array<i32>} : memref<8x1xf32, #tpu.memory_space<vmem>>, vector<8x1xf32>,
    return
  }
}

</mosaic_0001>

<bundles_post_ra>
// kernel: forward.1
= control target key start
LH: loop header
LB: loop body
LE: loop exit
PB: predicated region body
PF: predicated region fallthrough
CT: control target
= control target key end

     0   :  { %v1095_v0 = vmov 0.0|0.0   ;;  %vm1096_vm0 = vmmov 0   ;;  %v1097_v3 = vmov 0.0   ;;  %v1098_v5 = vmov 0   ;;  %s1230_s1 = inlined_call_operand.vmem [shape: f32[64,16], index: 1, kind: input, shape index: {}]   ;;  %s1231_s0 = inlined_call_operand.vmem [shape: s32[64,1], index: 0, kind: input, shape index: {}]   ;;  %s1232_s2 = inlined_call_operand.vmem [shape: f32[8,1], index: 2, kind: output, shape index: {}]  }
   0x1   :  { %1046 = vmatprep.subr.bf16.mxu0 %v1095_v0  ;;  %v12_v1 = vld [vmem:[%s1230_s1 + $0x8] sm:$0xff]  ;;  %v13_v2 = vld [vmem:[%s1230_s1 + $0x10] sm:$0xff]  ;;  %973 = vmatprep.mubr.msk.f32.mxu0 %vm1096_vm0, %v1097_v3  ;;  %v97_v6 = vld [vmem:[%s1231_s0] sm:$0xff]  ;;  %vm23_vm1 = vcmask 130048   ;;  %v19_v14 = vlaneseq  ;;  %vm155_vm2 = vcmask 64512   ;;  %vm902_vm11 = vcmask 7168  }
   0x2   :  { %v1047_v4 = vpack.c.bf16 %v13_v2, %v12_v1  ;;  %1077 = vset.pattern.permute.xlu0 %v1098_v5  ;;  %1078 = vset.pattern.permute.xlu1 %v1098_v5  ;;  %v99_v7 = vld [vmem:[%s1231_s0 + $0x10] sm:$0xff]  ;;  %v11_v8 = vld [vmem:[%s1230_s1] sm:$0xff]  ;;  %v98_v9 = vld [vmem:[%s1231_s0 + $0x8] sm:$0xff] }
   0x3   :  { %108 = vperm.xlu0 %1077, %v97_v6   ;;  %114 = vperm.xlu1 %1078, %v99_v7   ;;  %v100_v10 = vld [vmem:[%s1231_s0 + $0x18] sm:$0xff]  ;;  %v101_v11 = vld [vmem:[%s1231_s0 + $0x20] sm:$0xff]  ;;  %v102_v12 = vld [vmem:[%s1231_s0 + $0x28] sm:$0xff]  ;;  %v106_v15 = vand.u32 127, %v19_v14  ;;  %v1153_v18 = vshrl.u32 %v19_v14, 7 }
   0x4   :  { %1048 = vmatpush3.bf16.msra.mxu0 %v1047_v4  ;;  %v103_v13 = vld [vmem:[%s1231_s0 + $0x30] sm:$0xff]  ;;  %v1159_v21 = vld [vmem:[%s1230_s1 + $0x38] sm:$0xff]  ;;  %v15_v38 = vld [vmem:[%s1230_s1 + $0x20] sm:$0xff] }
   0x5   :  { %1049 = vmatprep.subr.bf16.mxu0 %v1095_v0  ;;  %v21_v20 = vsub.s32 0, %v1153_v18  ;;  %v14_v37 = vld [vmem:[%s1230_s1 + $0x18] sm:$0xff]  ;;  %v17_v14 = vld [vmem:[%s1230_s1 + $0x30] sm:$0xff] }
   0x6   :  { %v1050_v39 = vpack.c.bf16 %v15_v38, %v14_v37  ;;  %v104_v40 = vld [vmem:[%s1231_s0 + $0x38] sm:$0xff] }
   0x7   :  { %974 = vmatmul.mubr.msk.f32.vlgmr.msra.gmra.mrb[0].mxu0 %vm23_vm1, %v11_v8  ;;  %111 = vperm.xlu0 %1077, %v98_v9   ;;  %v22_v23 = vrot.slane %v1159_v21, %v21_v20  ;;  %v813_v20 = vsub.s32 1, %v1153_v18 }
   0x8   :  { %117 = vperm.xlu1 %1078, %v100_v10   ;;  %994 = vmatprep.mubr.msk.f32.mxu0 %vm1096_vm0, %v1097_v3 }
   0x9   :  { %1051 = vmatpush3.bf16.msra.mxu0 %v1050_v39 }
   0xa   :  { %1052 = vmatprep.subr.bf16.mxu0 %v1095_v0 }
   0xb   :  { %120 = vperm.xlu0 %1077, %v101_v11  }
   0xc   :  { %123 = vperm.xlu1 %1078, %v102_v12  }
   0xf   :  { %126 = vperm.xlu0 %1077, %v103_v13   ;;  %v16_v13 = vld [vmem:[%s1230_s1 + $0x28] sm:$0xff] }
  0x10   :  { %129 = vperm.xlu1 %1078, %v104_v40  }
  0x82   :  { %v109_v16 = vpop.permute.xlu0 %108  ;;  %v115_v19 = vpop.permute.xlu1 %114 }
  0x83   :  { %vm131_vm3 = vcmp.eq.s32.totalorder %v106_v15, %v109_v16  ;;  %vm133_vm4 = vcmp.eq.s32.totalorder %v106_v15, %v115_v19 }
  0x84   :  { %v909_v17 = vsel %vm131_vm3, 1.0, %v1097_v3  ;;  %v911_v29 = vsel %vm133_vm4, 1.0, %v1097_v3 }
  0x85   :  { %978 = vmatprep.mubr.msk.f32.mxu1 %vm155_vm2, %v909_v17 }
  0x86   :  { %v112_v22 = vpop.permute.xlu0 %111 }
  0x87   :  { %v118_v24 = vpop.permute.xlu1 %117  ;;  %vm132_vm5 = vcmp.eq.s32.totalorder %v106_v15, %v112_v22  ;;  %v814_v22 = vrot.slane %v1159_v21, %v813_v20 }
  0x88   :  { %vm134_vm6 = vcmp.eq.s32.totalorder %v106_v15, %v118_v24  ;;  %v910_v30 = vsel %vm132_vm5, 1.0, %v1097_v3 }
  0x89   :  { %v912_v32 = vsel %vm134_vm6, 1.0, %v1097_v3 }
  0x8a   :  { %v121_v26 = vpop.permute.xlu0 %120 }
  0x8b   :  { %v124_v31 = vpop.permute.xlu1 %123  ;;  %vm135_vm7 = vcmp.eq.s32.totalorder %v106_v15, %v121_v26 }
  0x8c   :  { %vm136_vm8 = vcmp.eq.s32.totalorder %v106_v15, %v124_v31  ;;  %v913_v34 = vsel %vm135_vm7, 1.0, %v1097_v3  ;;  %v899_v31 = vsub.s32 3, %v1153_v18 }
  0x8d   :  { %v914_v35 = vsel %vm136_vm8, 1.0, %v1097_v3 }
  0x8e   :  { %v127_v33 = vpop.permute.xlu0 %126 }
  0x8f   :  { %vm137_vm9 = vcmp.eq.s32.totalorder %v106_v15, %v127_v33  ;;  %v130_v44 = vpop.permute.xlu1 %129 }
  0x90   :  { %v915_v36 = vsel %vm137_vm9, 1.0, %v1097_v3  ;;  %vm138_vm10 = vcmp.eq.s32.totalorder %v106_v15, %v130_v44  ;;  %v1071_v15 = vpack.c.bf16 %v17_v14, %v16_v13 }
  0x91   :  { %v916_v45 = vsel %vm138_vm10, 1.0, %v1097_v3 }
  0xda   :  { %v93_v25 = vpop.f32.mrb[0].mxu0 }
  0xdb   :  { %v94_v27 = vadd.f32 %v93_v25, %v22_v23  ;;  %v975_v28 = vpop.f32.mrb[1].mxu0  ;;  %v891_v23 = vsub.s32 2, %v1153_v18 }
  0xdd   :  { %976 = vmatprep.subr.mxu1 %v94_v27 }
  0xde   :  { %977 = vmatpush3.msra.mxu1 %v94_v27  ;;  %v892_v27 = vrot.slane %v1159_v21, %v891_v23 }
  0xdf   :  { %979 = vmatmul.mubr.msk.f32.vlgmr.msra.gmra.mrb[0].mxu1 %vm155_vm2, %v910_v30  ;;  %1058 = vmatprep.subr.bf16.mxu1 %v1095_v0 }
  0xe0   :  { %981 = vmatprep.mubr.msk.f32.mxu1 %vm155_vm2, %v911_v29  ;;  %1060 = vmatpush3.bf16.msra.mxu1 %v1050_v39 }
  0xe1   :  { %1064 = vmatprep.subr.bf16.mxu1 %v1095_v0 }
  0xe3   :  { %982 = vmatmul.mubr.msk.f32.gmra.mrb[2].mxu1 %vm155_vm2, %v912_v32  ;;  %v900_v32 = vrot.slane %v1159_v21, %v899_v31 }
  0xe4   :  { %984 = vmatprep.mubr.msk.f32.mxu1 %vm155_vm2, %v913_v34 }
  0xe7   :  { %985 = vmatmul.mubr.msk.f32.gmra.mrb[4].mxu1 %vm155_vm2, %v914_v35 }
  0xe8   :  { %987 = vmatprep.mubr.msk.f32.mxu1 %vm155_vm2, %v915_v36 }
  0xeb   :  { %988 = vmatmul.mubr.msk.f32.gmra.mrb[6].mxu1 %vm155_vm2, %v916_v45 }
  0xec   :  { %1015 = vmatprep.mubr.msk.f32.mxu1 %vm1096_vm0, %v1097_v3 }
 0x1b2   :  { %v980_v41 = vpop.f32.mrb[0].mxu1 }
 0x1b3   :  { %v246_v42 = vpop.f32.mrb[1].mxu1 }
 0x1b4   :  { %1079 = vtanh.f32 %v246_v42 }
 0x1b6   :  { %v983_v46 = vpop.f32.mrb[2].mxu1 }
 0x1b7   :  { %v256_v47 = vpop.f32.mrb[3].mxu1 }
 0x1ba   :  { %v986_v48 = vpop.f32.mrb[4].mxu1 }
 0x1bb   :  { %v266_v49 = vpop.f32.mrb[5].mxu1 }
 0x1be   :  { %v1080_v43 = vpop.eup %1079  ;;  %v989_v54 = vpop.f32.mrb[6].mxu1 }
 0x1bf   :  { %995 = vmatmul.mubr.msk.f32.vlgmr.msra.gmra.mrb[2].mxu0 %vm23_vm1, %v1080_v43  ;;  %v276_v55 = vpop.f32.mrb[7].mxu1 }
 0x1c0   :  { %1054 = vmatpush3.bf16.msra.mxu0 %v1050_v39  ;;  %1001 = vmatprep.mubr.msk.f32.mxu0 %vm1096_vm0, %v1097_v3 }
 0x1c1   :  { %1055 = vmatprep.subr.bf16.mxu0 %v1095_v0 }
 0x292   :  { %v355_v50 = vpop.f32.mrb[2].mxu0 }
 0x293   :  { %v359_v51 = vadd.f32 %v980_v41, %v355_v50  ;;  %v996_v52 = vpop.f32.mrb[3].mxu0 }
 0x295   :  { %1081 = vtanh.f32 %v359_v51 }
 0x29f   :  { %v1082_v53 = vpop.eup %1081 }
 0x2a0   :  { %1002 = vmatmul.mubr.msk.f32.vlgmr.msra.gmra.mrb[4].mxu0 %vm23_vm1, %v1082_v53 }
 0x2a1   :  { %1057 = vmatpush3.bf16.msra.mxu0 %v1050_v39  ;;  %1008 = vmatprep.mubr.msk.f32.mxu0 %vm1096_vm0, %v1097_v3 }
 0x2a2   :  { %1061 = vmatprep.subr.bf16.mxu0 %v1095_v0 }
 0x373   :  { %v430_v56 = vpop.f32.mrb[4].mxu0 }
 0x374   :  { %v434_v57 = vadd.f32 %v430_v56, %v256_v47  ;;  %v1003_v58 = vpop.f32.mrb[5].mxu0 }
 0x376   :  { %1083 = vtanh.f32 %v434_v57 }
 0x380   :  { %v1084_v59 = vpop.eup %1083 }
 0x381   :  { %1009 = vmatmul.mubr.msk.f32.vlgmr.msra.gmra.mrb[6].mxu0 %vm23_vm1, %v1084_v59 }
 0x382   :  { %1063 = vmatpush3.bf16.msra.mxu0 %v1050_v39  ;;  %1022 = vmatprep.mubr.msk.f32.mxu0 %vm1096_vm0, %v1097_v3 }
 0x383   :  { %1067 = vmatprep.subr.bf16.mxu0 %v1095_v0 }
 0x454   :  { %v505_v60 = vpop.f32.mrb[6].mxu0 }
 0x455   :  { %v509_v61 = vadd.f32 %v983_v46, %v505_v60  ;;  %v1010_v62 = vpop.f32.mrb[7].mxu0 }
 0x457   :  { %1085 = vtanh.f32 %v509_v61 }
 0x461   :  { %v1086_v63 = vpop.eup %1085 }
 0x462   :  { %1016 = vmatmul.mubr.msk.f32.vlgmr.msra.gmra.mrb[8].mxu1 %vm23_vm1, %v1086_v63 }
 0x463   :  { %1066 = vmatpush3.bf16.msra.mxu1 %v1050_v39  ;;  %1029 = vmatprep.mubr.msk.f32.mxu1 %vm1096_vm0, %v1097_v3 }
 0x464   :  { %1070 = vmatprep.subr.bf16.mxu1 %v1095_v0 }
 0x535   :  { %v580_v1 = vpop.f32.mrb[8].mxu1 }
 0x536   :  { %v584_v2 = vadd.f32 %v580_v1, %v266_v49  ;;  %v1017_v4 = vpop.f32.mrb[9].mxu1 }
 0x538   :  { %1087 = vtanh.f32 %v584_v2 }
 0x542   :  { %v1088_v5 = vpop.eup %1087 }
 0x543   :  { %1023 = vmatmul.mubr.msk.f32.vlgmr.msra.gmra.mrb[8].mxu0 %vm23_vm1, %v1088_v5 }
 0x544   :  { %1069 = vmatpush3.bf16.msra.mxu0 %v1050_v39  ;;  %1036 = vmatprep.mubr.msk.f32.mxu0 %vm1096_vm0, %v1097_v3 }
 0x616   :  { %v655_v6 = vpop.f32.mrb[8].mxu0 }
 0x617   :  { %v659_v7 = vadd.f32 %v986_v48, %v655_v6  ;;  %v1024_v8 = vpop.f32.mrb[9].mxu0 }
 0x619   :  { %1089 = vtanh.f32 %v659_v7 }
 0x623   :  { %v1090_v9 = vpop.eup %1089 }
 0x624   :  { %1030 = vmatmul.mubr.msk.f32.vlgmr.msra.gmra.mrb[10].mxu1 %vm23_vm1, %v1090_v9 }
 0x625   :  { %1043 = vmatprep.mubr.msk.f32.mxu1 %vm1096_vm0, %v1097_v3  ;;  %1072 = vmatpush3.bf16.msra.mxu1 %v1071_v15 }
 0x6f7   :  { %v730_v0 = vpop.f32.mrb[10].mxu1 }
 0x6f8   :  { %v734_v10 = vadd.f32 %v730_v0, %v276_v55  ;;  %v1031_v11 = vpop.f32.mrb[11].mxu1 }
 0x6fa   :  { %1091 = vtanh.f32 %v734_v10 }
 0x704   :  { %v1092_v12 = vpop.eup %1091 }
 0x705   :  { %1037 = vmatmul.mubr.msk.f32.vlgmr.msra.gmra.mrb[10].mxu0 %vm23_vm1, %v1092_v12 }
 0x7d8   :  { %v805_v16 = vpop.f32.mrb[10].mxu0 }
 0x7d9   :  { %v809_v17 = vadd.f32 %v989_v54, %v805_v16  ;;  %v1038_v3 = vpop.f32.mrb[11].mxu0 }
 0x7db   :  { %1093 = vtanh.f32 %v809_v17 }
 0x7e5   :  { %v1094_v19 = vpop.eup %1093 }
 0x7e6   :  { %1044 = vmatmul.mubr.msk.f32.vlgmr.msra.gmra.mrb[12].mxu1 %vm23_vm1, %v1094_v19 }
 0x8b9   :  { %v884_v24 = vpop.f32.mrb[12].mxu1 }
 0x8ba   :  { %v885_v25 = vadd.f32 %v884_v24, %v814_v22  ;;  %v1045_v26 = vpop.f32.mrb[13].mxu1 }
 0x8bc   :  { %v888_v28 = vmax.f32 %v885_v25, 0.0 }
 0x8be   :  { %v893_v29 = vmul.f32 %v892_v27, %v888_v28 }
 0x8c0   :  { %v894_v30 = vsel %vm23_vm1, %v893_v29, 0.0 }
 0x8c1   :  { %895 = vadd.xlane.f32.xlu0 %v894_v30 }
 0x94e   :  { %v896_v33 = vpop.xlane.xlu0 %895 }
 0x94f   :  { %v901_v34 = vadd.f32 %v900_v32, %v896_v33 }
 0x951   :  { %903 = vst.msk [vmem:[%s1232_s2] sm:$0xff] %vm902_vm11, %v901_v34 }

</bundles_post_ra>
